<compile_context>
chip_gen: v7x
topology: tpu7x:2x2x1
jax: 0.10.0
libtpu: 0.0.40
codegen_flags: <defaults>
</compile_context>

<pallas_src>
import functools
import math
from dataclasses import dataclass

import jax
import jax.numpy as jnp
from jax.experimental import pallas as pl
from jax.experimental.pallas import tpu as pltpu

LANE = 128
BF16_ROWS = 16  # bf16 packs 16 rows per vreg (sublane packing)


def _round_up(x, m):
    return ((x + m - 1) // m) * m


def _choose_row_tile(B):
    """Row tile: multiple of 16, single tile for small B, >=2 grid steps for large B."""
    if B <= 256:
        return _round_up(B, BF16_ROWS)
    # >= 2 steps lets a core-parallel batch axis feed v7x's second TensorCore while
    # tiles stay large (<=1024 rows) to amortize the ~0.35us per-grid-step overhead.
    return min(_round_up(-(-B // 2), BF16_ROWS), 1024)


def _batch_dim_semantics(num_steps):
    """CORE_PARALLEL only helps (and only exists meaningfully) on v7x's 2-TC chips."""
    if num_steps >= 2:
        try:
            kind = jax.devices()[0].device_kind.lower()
        except Exception:  # pragma: no cover - device query is best-effort
            kind = ""
        if "v7" in kind or "7x" in kind or "tpu7" in kind:
            return (pltpu.CORE_PARALLEL,)
    return ("parallel",)


def dueling_kernel(x_ref, w1t_ref, b1_ref, wht_ref, bh_ref, o_ref, *,
                   n_output, o_pad, avg_advantage):
    # phi: features = relu(x @ W1^T + b1)  (bf16 MXU, f32 accumulate, VPU relu)
    h = jnp.dot(x_ref[...], w1t_ref[...], preferred_element_type=jnp.float32)
    h = jnp.maximum(h + b1_ref[...], 0.0)
    hb = h.astype(jnp.bfloat16)  # bf16 back into the MXU

    # Fused dueling head: one matmul -> [ advantage (o_pad lanes) | value (1 lane of a
    # 128-lane block) ].  Padded advantage lanes are exactly 0 (zero-padded W & b).
    head = jnp.dot(hb, wht_ref[...], preferred_element_type=jnp.float32) + bh_ref[...]
    adv = head[:, :o_pad]
    val = head[:, o_pad:][:, :1]          # per-row scalar value stream

    if avg_advantage:
        # padded lanes contribute 0 to the sum; divide by the TRUE n_output
        stat = adv.sum(axis=-1, keepdims=True) * (1.0 / n_output)
    else:
        lane = jax.lax.broadcasted_iota(jnp.int32, adv.shape, 1)
        stat = jnp.max(jnp.where(lane < n_output, adv, -jnp.inf),
                       axis=-1, keepdims=True)

    # q = adv + (value - stat): (TB,1) lane-broadcast rides the otherwise-idle XLU slot.
    o_ref[...] = (adv + (val - stat)).astype(o_ref.dtype)


@dataclass(frozen=True)
class DuelingParams:
    w1t: jax.Array        # (Fp, Hp) bf16, pre-transposed phi weight
    b1: jax.Array         # (1, Hp)  f32
    wht: jax.Array        # (Hp, Op+128) bf16, fused [A | V] head weight
    bh: jax.Array         # (1, Op+128) f32
    n_input: int
    n_features: int
    n_output: int
    Fp: int
    Hp: int
    Op: int
    avg_advantage: bool


def prepare_params(w1, b1, wa, ba, wv, bv, *, avg_advantage=True):
    """One-time packing: transpose, zero-pad to lane-dense shapes, bf16 cast, fuse A|V.

    Call once and reuse the result; only activation padding remains per forward call.
    NOTE: padded lanes of wht/bh must stay exactly zero (kernel mean/max relies on it).
    """
    w1 = jnp.asarray(w1, jnp.float32)
    b1 = jnp.asarray(b1, jnp.float32).reshape(-1)
    wa = jnp.asarray(wa, jnp.float32)
    ba = jnp.asarray(ba, jnp.float32).reshape(-1)
    wv = jnp.asarray(wv, jnp.float32).reshape(-1)
    bv = jnp.asarray(bv, jnp.float32).reshape(-1)

    H, F = w1.shape
    O = wa.shape[0]
    Fp, Hp, Op = _round_up(F, LANE), _round_up(H, LANE), _round_up(O, LANE)
    head_w = Op + LANE  # advantage lanes + one 128-lane block holding the value stream

    w1t = jnp.zeros((Fp, Hp), jnp.bfloat16).at[:F, :H].set(w1.T.astype(jnp.bfloat16))
    b1p = jnp.zeros((1, Hp), jnp.float32).at[0, :H].set(b1)

    wht = jnp.zeros((Hp, head_w), jnp.bfloat16)
    wht = wht.at[:H, :O].set(wa.T.astype(jnp.bfloat16))
    wht = wht.at[:H, Op].set(wv.astype(jnp.bfloat16))          # V in a single lane
    bhp = jnp.zeros((1, head_w), jnp.float32)
    bhp = bhp.at[0, :O].set(ba).at[0, Op].set(bv[0])

    return DuelingParams(w1t=w1t, b1=b1p, wht=wht, bh=bhp,
                         n_input=F, n_features=H, n_output=O,
                         Fp=Fp, Hp=Hp, Op=Op, avg_advantage=avg_advantage)


def dueling_forward(state, params: DuelingParams, action=None):
    x = jnp.asarray(state, jnp.float32)
    if x.ndim > 2:
        x = x.reshape(x.shape[0], -1)
    B, F = x.shape
    assert F == params.n_input, (F, params.n_input)

    Fp, Hp, Op = params.Fp, params.Hp, params.Op
    head_w = Op + LANE

    TB = _choose_row_tile(B)
    Bp = _round_up(B, TB)
    steps = Bp // TB

    # Per-call work on the wrapper path: only pad/cast the activations.
    xp = jnp.zeros((Bp, Fp), jnp.bfloat16).at[:B, :F].set(x.astype(jnp.bfloat16))

    kernel = functools.partial(dueling_kernel, n_output=params.n_output,
                               o_pad=Op, avg_advantage=params.avg_advantage)

    # Rough VMEM budget (double-buffered) so larger feature nets / row tiles don't trip
    # v5e's 16 MiB scoped default; clamp at v7x's 64 MiB physical VMEM.
    weight_bytes = Fp * Hp * 2 + Hp * head_w * 2 + (Hp + head_w) * 4
    tile_bytes = TB * Fp * 2 + TB * Op * 4
    vmem_limit = int(min(max(2 * (weight_bytes + tile_bytes) + (2 << 20), 16 << 20),
                         64 << 20))

    cost = pl.CostEstimate(
        flops=2 * Bp * (Fp * Hp + Hp * head_w),
        transcendentals=0,
        bytes_accessed=int(Bp * Fp * 2 + weight_bytes + Bp * Op * 4))

    q_pad = pl.pallas_call(
        kernel,
        out_shape=jax.ShapeDtypeStruct((Bp, Op), jnp.float32),
        grid_spec=pltpu.PrefetchScalarGridSpec(
            num_scalar_prefetch=0,
            grid=(steps,),
            in_specs=[
                pl.BlockSpec((TB, Fp), lambda i: (i, 0)),        # x: row-tiled stream
                pl.BlockSpec((Fp, Hp), lambda i: (0, 0)),        # phi weight: stationary
                pl.BlockSpec((1, Hp), lambda i: (0, 0)),         # phi bias
                pl.BlockSpec((Hp, head_w), lambda i: (0, 0)),    # fused A|V head weight
                pl.BlockSpec((1, head_w), lambda i: (0, 0)),     # fused head bias
            ],
            out_specs=pl.BlockSpec((TB, Op), lambda i: (i, 0)),  # lane-dense output
        ),
        compiler_params=pltpu.CompilerParams(
            dimension_semantics=_batch_dim_semantics(steps),
            vmem_limit_bytes=vmem_limit),
        cost_estimate=cost,
    )(xp, params.w1t, params.b1, params.wht, params.bh)

    q = q_pad[:B, :params.n_output]
    if action is None:
        return q
    # torch: q.gather(1, action.long()).squeeze()  -> plain-JAX epilogue.
    q_acted = jnp.take_along_axis(q, action.astype(jnp.int32), axis=1)
    return jnp.squeeze(q_acted)


def make_dueling_forward(w1, b1, wa, ba, wv, bv, *, avg_advantage=True):
    """Pack weights once; return jitted forward closures (no per-call weight packing)."""
    params = prepare_params(w1, b1, wa, ba, wv, bv, avg_advantage=avg_advantage)

    @jax.jit
    def fwd(state):
        return dueling_forward(state, params)

    @jax.jit
    def fwd_acted(state, action):
        return dueling_forward(state, params, action)

    return fwd, fwd_acted


def init_params(key, n_input, n_features, n_output):
    k1, k2, k3, k4, k5, k6 = jax.random.split(key, 6)
    # phi feature layer: xavier_uniform with relu gain (MushroomRL test network)
    lim1 = math.sqrt(2.0) * math.sqrt(6.0 / (n_input + n_features))
    w1 = jax.random.uniform(k1, (n_features, n_input), minval=-lim1, maxval=lim1,
                            dtype=jnp.float32)
    bb1 = 1.0 / math.sqrt(n_input)
    b1 = jax.random.uniform(k2, (n_features,), minval=-bb1, maxval=bb1,
                            dtype=jnp.float32)
    # A, V heads: xavier_uniform, gain('linear') = 1 as in DuelingNetwork.__init__
    lima = math.sqrt(6.0 / (n_features + n_output))
    wa = jax.random.uniform(k3, (n_output, n_features), minval=-lima, maxval=lima,
                            dtype=jnp.float32)
    bbh = 1.0 / math.sqrt(n_features)
    ba = jax.random.uniform(k4, (n_output,), minval=-bbh, maxval=bbh,
                            dtype=jnp.float32)
    limv = math.sqrt(6.0 / (n_features + 1))
    wv = jax.random.uniform(k5, (1, n_features), minval=-limv, maxval=limv,
                            dtype=jnp.float32)
    bv = jax.random.uniform(k6, (1,), minval=-bbh, maxval=bbh, dtype=jnp.float32)
    return w1, b1, wa, ba, wv, bv


def reference(state, w1, b1, wa, ba, wv, bv, avg_advantage=True):
    x = state.astype(jnp.float32)
    h = jnp.maximum(x @ w1.T + b1, 0.0)
    adv = h @ wa.T + ba
    val = h @ wv.T + bv
    q = val + adv
    if avg_advantage:
        q = q - adv.mean(axis=1, keepdims=True)
    else:
        q = q - adv.max(axis=1, keepdims=True)
    return q


if __name__ == "__main__":
    key = jax.random.PRNGKey(0)
    k_state, k_param, k_act, k_state2 = jax.random.split(key, 4)

    batch = 8
    n_input = 32     # input_shape[-1]
    n_features = 32  # n_features
    n_output = 16    # output_shape[0]

    state = jax.random.normal(k_state, (batch, n_input), dtype=jnp.float32)
    w1, b1, wa, ba, wv, bv = init_params(k_param, n_input, n_features, n_output)

    fwd, fwd_acted = make_dueling_forward(w1, b1, wa, ba, wv, bv, avg_advantage=True)

    # q-values path
    q = fwd(state)
    jax.block_until_ready(q)
    q_ref = reference(state, w1, b1, wa, ba, wv, bv, avg_advantage=True)
    assert q.shape == (batch, n_output)
    # bf16 MXU operands vs f32 reference -> relaxed tolerance.
    assert jnp.allclose(q, q_ref, atol=5e-2, rtol=5e-2), (
        float(jnp.max(jnp.abs(q - q_ref))))

    # action-gather path (torch q.gather(1, action).squeeze())
    action = jax.random.randint(k_act, (batch, 1), 0, n_output)
    q_acted = fwd_acted(state, action)
    jax.block_until_ready(q_acted)
    q_acted_ref = jnp.squeeze(jnp.take_along_axis(q_ref, action, axis=1))
    assert q_acted.shape == (batch,)
    assert jnp.allclose(q_acted, q_acted_ref, atol=5e-2, rtol=5e-2)

    # larger batch: exercises the multi-step row-tiled grid and row padding
    big_b = 320
    state_big = jax.random.normal(k_state2, (big_b, n_input), dtype=jnp.float32)
    q_big = fwd(state_big)
    jax.block_until_ready(q_big)
    q_big_ref = reference(state_big, w1, b1, wa, ba, wv, bv, avg_advantage=True)
    assert q_big.shape == (big_b, n_output)
    assert jnp.allclose(q_big, q_big_ref, atol=5e-2, rtol=5e-2)

    print("KERNEL_OK")
</pallas_src>

<mosaic_0001>
module attributes {stable_mosaic.version = 11 : i64} {
  func.func @dueling_kernel(%arg0: i32, %arg1: memref<16x128xbf16, #tpu.memory_space<vmem>>, %arg2: memref<128x128xbf16, #tpu.memory_space<vmem>>, %arg3: memref<1x128xf32, #tpu.memory_space<vmem>>, %arg4: memref<128x256xbf16, #tpu.memory_space<vmem>>, %arg5: memref<1x256xf32, #tpu.memory_space<vmem>>, %arg6: memref<16x128xf32, #tpu.memory_space<vmem>>) attributes {dimension_semantics = [#tpu.dimension_semantics<parallel>], iteration_bounds = array<i64: 1>, scalar_prefetch = 0 : i64, scratch_operands = 0 : i64, tpu.core_type = #tpu.core_type<tc>, window_params = [{transform_indices = @transform_0, window_bounds = array<i64: 16, 128>}, {pipeline_mode = #tpu.pipeline_mode<synchronous>, transform_indices = @transform_1, window_bounds = array<i64: 128, 128>}, {pipeline_mode = #tpu.pipeline_mode<synchronous>, transform_indices = @transform_2, window_bounds = array<i64: 1, 128>}, {pipeline_mode = #tpu.pipeline_mode<synchronous>, transform_indices = @transform_3, window_bounds = array<i64: 128, 256>}, {pipeline_mode = #tpu.pipeline_mode<synchronous>, transform_indices = @transform_4, window_bounds = array<i64: 1, 256>}, {transform_indices = @transform_5, window_bounds = array<i64: 16, 128>}]} {
    %c0 = arith.constant 0 : index
    %c0_0 = arith.constant 0 : index
    %0 = vector.load %arg1[%c0, %c0_0] : memref<16x128xbf16, #tpu.memory_space<vmem>>, vector<16x128xbf16>
    %c0_1 = arith.constant 0 : index
    %c0_2 = arith.constant 0 : index
    %1 = vector.load %arg2[%c0_1, %c0_2] : memref<128x128xbf16, #tpu.memory_space<vmem>>, vector<128x128xbf16>
    %cst = arith.constant dense<0.000000e+00> : vector<16x128xf32>
    %2 = tpu.matmul %0, %1, %cst {dimension_numbers = #tpu.dot_dimension_numbers<[1], [0], [0], [1], [0, 0, 1, 1], [], []>} : vector<16x128xbf16>, vector<128x128xbf16>, vector<16x128xf32> -> vector<16x128xf32>
    %c0_3 = arith.constant 0 : index
    %c0_4 = arith.constant 0 : index
    %3 = vector.load %arg3[%c0_3, %c0_4] : memref<1x128xf32, #tpu.memory_space<vmem>>, vector<1x128xf32>
    %4 = vector.broadcast %3 : vector<1x128xf32> to vector<16x128xf32>
    %5 = arith.addf %2, %4 : vector<16x128xf32>
    %cst_5 = arith.constant 0.000000e+00 : f32
    %6 = vector.broadcast %cst_5 : f32 to vector<16x128xf32>
    %7 = arith.maximumf %5, %6 : vector<16x128xf32>
    %8 = arith.truncf %7 : vector<16x128xf32> to vector<16x128xbf16>
    %c0_6 = arith.constant 0 : index
    %c0_7 = arith.constant 0 : index
    %9 = vector.load %arg4[%c0_6, %c0_7] : memref<128x256xbf16, #tpu.memory_space<vmem>>, vector<128x256xbf16>
    %cst_8 = arith.constant dense<0.000000e+00> : vector<16x256xf32>
    %10 = tpu.matmul %8, %9, %cst_8 {dimension_numbers = #tpu.dot_dimension_numbers<[1], [0], [0], [1], [0, 0, 1, 1], [], []>} : vector<16x128xbf16>, vector<128x256xbf16>, vector<16x256xf32> -> vector<16x256xf32>
    %c0_9 = arith.constant 0 : index
    %c0_10 = arith.constant 0 : index
    %11 = vector.load %arg5[%c0_9, %c0_10] : memref<1x256xf32, #tpu.memory_space<vmem>>, vector<1x256xf32>
    %12 = vector.broadcast %11 : vector<1x256xf32> to vector<16x256xf32>
    %13 = arith.addf %10, %12 : vector<16x256xf32>
    %14 = vector.extract_strided_slice %13 {offsets = [0, 0], sizes = [16, 128], strides = [1, 1]} : vector<16x256xf32> to vector<16x128xf32>
    %15 = vector.extract_strided_slice %13 {offsets = [0, 128], sizes = [16, 128], strides = [1, 1]} : vector<16x256xf32> to vector<16x128xf32>
    %16 = vector.extract_strided_slice %15 {offsets = [0, 0], sizes = [16, 1], strides = [1, 1]} : vector<16x128xf32> to vector<16x1xf32>
    %cst_11 = arith.constant dense<0.000000e+00> : vector<16xf32>
    %17 = vector.multi_reduction <add>, %14, %cst_11 [1] : vector<16x128xf32> to vector<16xf32>
    %18 = vector.shape_cast %17 : vector<16xf32> to vector<16x1xf32>
    %cst_12 = arith.constant 6.250000e-02 : f32
    %19 = vector.broadcast %cst_12 : f32 to vector<16x1xf32>
    %20 = arith.mulf %18, %19 : vector<16x1xf32>
    %21 = arith.subf %16, %20 : vector<16x1xf32>
    %22 = vector.broadcast %21 : vector<16x1xf32> to vector<16x128xf32>
    %23 = arith.addf %14, %22 : vector<16x128xf32>
    %c0_13 = arith.constant 0 : index
    %c0_14 = arith.constant 0 : index
    %24 = vector.load %arg6[%c0_13, %c0_14] : memref<16x128xf32, #tpu.memory_space<vmem>>, vector<16x128xf32>
    tpu.vector_store %arg6[%c0_13, %c0_14], %23 {strides = array<i32>} : memref<16x128xf32, #tpu.memory_space<vmem>>, vector<16x128xf32>,
    return
  }
  func.func @transform_0(%arg0: i32) -> (i32, i32) {
    %c0_i32 = arith.constant 0 : i32
    %c0_i32_0 = arith.constant 0 : i32
    return %arg0, %c0_i32 : i32, i32
  }
  func.func @transform_1(%arg0: i32) -> (i32, i32) {
    %c0_i32 = arith.constant 0 : i32
    %c0_i32_0 = arith.constant 0 : i32
    %c0_i32_1 = arith.constant 0 : i32
    return %c0_i32, %c0_i32_0 : i32, i32
  }
  func.func @transform_2(%arg0: i32) -> (i32, i32) {
    %c0_i32 = arith.constant 0 : i32
    %c0_i32_0 = arith.constant 0 : i32
    %c0_i32_1 = arith.constant 0 : i32
    return %c0_i32, %c0_i32_0 : i32, i32
  }
  func.func @transform_3(%arg0: i32) -> (i32, i32) {
    %c0_i32 = arith.constant 0 : i32
    %c0_i32_0 = arith.constant 0 : i32
    %c0_i32_1 = arith.constant 0 : i32
    return %c0_i32, %c0_i32_0 : i32, i32
  }
  func.func @transform_4(%arg0: i32) -> (i32, i32) {
    %c0_i32 = arith.constant 0 : i32
    %c0_i32_0 = arith.constant 0 : i32
    %c0_i32_1 = arith.constant 0 : i32
    return %c0_i32, %c0_i32_0 : i32, i32
  }
  func.func @transform_5(%arg0: i32) -> (i32, i32) {
    %c0_i32 = arith.constant 0 : i32
    %c0_i32_0 = arith.constant 0 : i32
    return %arg0, %c0_i32 : i32, i32
  }
}

</mosaic_0001>

<bundles_post_ra>
// kernel: fwd.1
= control target key start
LH: loop header
LB: loop body
LE: loop exit
PB: predicated region body
PF: predicated region fallthrough
CT: control target
= control target key end

     0   :  { %v414_v0 = vmov 0.0   ;;  %vm415_vm0 = vmmov 0   ;;  %v416_v26 = vmov 0   ;;  %v162_v37 = vlaneseq  ;;  %s534_s1 = inlined_call_operand.vmem [shape: bf16[128,128], index: 1, kind: input, shape index: {}]   ;;  %s535_s3 = inlined_call_operand.vmem [shape: bf16[128,256], index: 3, kind: input, shape index: {}]   ;;  %s536_s0 = inlined_call_operand.vmem [shape: bf16[16,128], index: 0, kind: input, shape index: {}]   ;;  %s537_s2 = inlined_call_operand.vmem [shape: f32[1,128], index: 2, kind: input, shape index: {}]   ;;  %s538_s4 = inlined_call_operand.vmem [shape: f32[1,256], index: 4, kind: input, shape index: {}]   ;;  %s539_s5 = inlined_call_operand.vmem [shape: f32[16,128], index: 5, kind: output, shape index: {}]  }
   0x1   :  { %356 = vmatprep.subr.bf16.mxu0 %v414_v0  ;;  %v381_v1 = vld [vmem:[%s534_s1] sm:$0xff]   ;;  %372 = vmatprep.mubr.msk.bf16.mxu0 %vm415_vm0, %v414_v0  ;;  %v382_v2 = vld [vmem:[%s534_s1 + $0x8] sm:$0xff]   ;;  %v383_v3 = vld [vmem:[%s534_s1 + $0x10] sm:$0xff]  }
   0x2   :  { %357 = vmatpush3.bf16.msra.mxu0 %v381_v1  ;;  %v384_v4 = vld [vmem:[%s534_s1 + $0x18] sm:$0xff]   ;;  %v390_v5 = vld [vmem:[%s535_s3 + $0x4] ss:$8 sps:$4 sm:$0xff]   ;;  %v392_v6 = vld [vmem:[%s535_s3] ss:$8 sps:$4 sm:$0xff]   ;;  %284 = vmatprep.mubr.bf16.mxu1 %v416_v26  ;;  %v163_v38 = vshrl.u32 %v162_v37, 7 }
   0x3   :  { %358 = vmatprep.subr.bf16.mxu0 %v414_v0  ;;  %252 = vmatprep.subr.bf16.mxu1 %v390_v5  ;;  %v393_v7 = vld [vmem:[%s535_s3 + $0x14] ss:$8 sps:$4 sm:$0xff]   ;;  %v395_v8 = vld [vmem:[%s535_s3 + $0x10] ss:$8 sps:$4 sm:$0xff]   ;;  %v396_v9 = vld [vmem:[%s535_s3 + $0x24] ss:$8 sps:$4 sm:$0xff]  }
   0x4   :  { %253 = vmatpush1.bf16.msra.mxu1 %v392_v6  ;;  %v385_v10 = vld [vmem:[%s534_s1 + $0x20] sm:$0xff]   ;;  %v399_v12 = vld [vmem:[%s535_s3 + $0x34] ss:$8 sps:$4 sm:$0xff]   ;;  %v386_v13 = vld [vmem:[%s534_s1 + $0x28] sm:$0xff]   ;;  %379 = vset.pattern.permute.xlu1 %v416_v26  ;;  %v164_v39 = vsub.s32 0, %v163_v38  ;;  %v168_v48 = vsub.s32 1, %v163_v38 }
   0x5   :  { %254 = vmatprep.subr.bf16.mxu1 %v393_v7  ;;  %v398_v11 = vld [vmem:[%s535_s3 + $0x20] ss:$8 sps:$4 sm:$0xff]   ;;  %v401_v14 = vld [vmem:[%s535_s3 + $0x30] ss:$8 sps:$4 sm:$0xff]   ;;  %v402_v15 = vld [vmem:[%s535_s3 + $0x44] ss:$8 sps:$4 sm:$0xff]   ;;  %380 = vset.pattern.permute.xlu0 %v416_v26 }
   0x6   :  { %359 = vmatpush3.bf16.msra.mxu0 %v382_v2  ;;  %v387_v16 = vld [vmem:[%s534_s1 + $0x30] sm:$0xff]   ;;  %v404_v17 = vld [vmem:[%s535_s3 + $0x40] ss:$8 sps:$4 sm:$0xff]   ;;  %v388_v19 = vld [vmem:[%s534_s1 + $0x38] sm:$0xff]  }
   0x7   :  { %360 = vmatprep.subr.bf16.mxu0 %v414_v0  ;;  %v405_v18 = vld [vmem:[%s535_s3 + $0x54] ss:$8 sps:$4 sm:$0xff]   ;;  %v407_v20 = vld [vmem:[%s535_s3 + $0x50] ss:$8 sps:$4 sm:$0xff]   ;;  %v389_v21 = vld [vmem:[%s536_s0] sm:$0xff]  }
   0x8   :  { %255 = vmatpush1.bf16.msra.mxu1 %v395_v8  ;;  %v408_v22 = vld [vmem:[%s535_s3 + $0x64] ss:$8 sps:$4 sm:$0xff]   ;;  %v410_v23 = vld [vmem:[%s535_s3 + $0x60] ss:$8 sps:$4 sm:$0xff]   ;;  %v411_v24 = vld [vmem:[%s535_s3 + $0x74] ss:$8 sps:$4 sm:$0xff]  }
   0x9   :  { %256 = vmatprep.subr.bf16.mxu1 %v396_v9  ;;  %v413_v25 = vld [vmem:[%s535_s3 + $0x70] ss:$8 sps:$4 sm:$0xff]   ;;  %v321_v27 = vld [vmem:[%s537_s2] ss:$0 sm:$0xff] }
   0xa   :  { %361 = vmatpush3.bf16.msra.mxu0 %v383_v3  ;;  %v160_v40 = vld [vmem:[%s538_s4] sm:$0x3] }
   0xb   :  { %362 = vmatprep.subr.bf16.mxu0 %v414_v0  ;;  %v165_v41 = vrot.slane %v160_v40, %v164_v39  ;;  %v169_v49 = vrot.slane %v160_v40, %v168_v48 }
   0xc   :  { %257 = vmatpush1.bf16.msra.mxu1 %v398_v11 }
   0xd   :  { %258 = vmatprep.subr.bf16.mxu1 %v399_v12 }
   0xe   :  { %363 = vmatpush3.bf16.msra.mxu0 %v384_v4 }
   0xf   :  { %364 = vmatprep.subr.bf16.mxu0 %v414_v0 }
  0x10   :  { %259 = vmatpush1.bf16.msra.mxu1 %v401_v14 }
  0x11   :  { %260 = vmatprep.subr.bf16.mxu1 %v402_v15 }
  0x12   :  { %365 = vmatpush3.bf16.msra.mxu0 %v385_v10 }
  0x13   :  { %366 = vmatprep.subr.bf16.mxu0 %v414_v0 }
  0x14   :  { %261 = vmatpush1.bf16.msra.mxu1 %v404_v17 }
  0x15   :  { %262 = vmatprep.subr.bf16.mxu1 %v405_v18 }
  0x16   :  { %367 = vmatpush3.bf16.msra.mxu0 %v386_v13 }
  0x17   :  { %368 = vmatprep.subr.bf16.mxu0 %v414_v0 }
  0x18   :  { %263 = vmatpush1.bf16.msra.mxu1 %v407_v20 }
  0x19   :  { %264 = vmatprep.subr.bf16.mxu1 %v408_v22 }
  0x1a   :  { %369 = vmatpush3.bf16.msra.mxu0 %v387_v16 }
  0x1b   :  { %370 = vmatprep.subr.bf16.mxu0 %v414_v0 }
  0x1c   :  { %265 = vmatpush1.bf16.msra.mxu1 %v410_v23 }
  0x1d   :  { %266 = vmatprep.subr.bf16.mxu1 %v411_v24 }
  0x1e   :  { %371 = vmatpush3.bf16.msra.mxu0 %v388_v19 }
  0x20   :  { %267 = vmatpush1.bf16.msra.mxu1 %v413_v25 }
  0x21   :  { %373 = vmatmul.mubr.bf16.vlgmr.msra.gmra.mrb[0].mxu0 %v389_v21 }
  0xf4   :  { %v134_v28 = vpop.f32.mrb[0].mxu0 }
  0xf5   :  { %v135_v29 = vadd.f32 %v321_v27, %v134_v28  ;;  %v374_v30 = vpop.f32.mrb[1].mxu0 }
  0xf6   :  { %v137_v31 = vpop.f32.mrb[2].mxu0 }
  0xf7   :  { %v138_v32 = vadd.f32 %v321_v27, %v137_v31  ;;  %v375_v33 = vpop.f32.mrb[3].mxu0  ;;  %v141_v34 = vmax.f32 %v135_v29, 0.0 }
  0xf9   :  { %v142_v35 = vmax.f32 %v138_v32, 0.0 }
  0xfb   :  { %v143_v36 = vpack.c.bf16 %v142_v35, %v141_v34 }
  0xfd   :  { %285 = vmatmul.mubr.bf16.vlgmr.msra.gmra.mrb[0].mxu1 %v143_v36 }
 0x1d0   :  { %v286_v42 = vpop.f32.mrb[0].mxu1 }
 0x1d1   :  { %v287_v43 = vadd.f32 %v286_v42, %v165_v41  ;;  %v288_v44 = vpop.f32.mrb[1].mxu1 }
 0x1d2   :  { %v290_v45 = vpop.f32.mrb[2].mxu1  ;;  %v289_v51 = vadd.f32 %v288_v44, %v169_v49 }
 0x1d3   :  { %v292_v46 = vpop.f32.mrb[3].mxu1  ;;  %295 = vadd.xlane.f32.xlu0 %v287_v43  ;;  %v291_v47 = vadd.f32 %v290_v45, %v165_v41 }
 0x1d4   :  { %v293_v55 = vadd.f32 %v292_v46, %v169_v49 }
 0x1d7   :  { %297 = vadd.xlane.f32.xlu0 %v291_v47 }
 0x260   :  { %v296_v50 = vpop.xlane.xlu0 %295 }
 0x261   :  { %v299_v52 = vmul.f32 0.0625, %v296_v50 }
 0x263   :  { %v301_v53 = vsub.f32 %v289_v51, %v299_v52 }
 0x264   :  { %v298_v54 = vpop.xlane.xlu0 %297 }
 0x265   :  { %v300_v56 = vmul.f32 0.0625, %v298_v54  ;;  %305 = vperm.xlu1 %379, %v301_v53  }
 0x267   :  { %v302_v57 = vsub.f32 %v293_v55, %v300_v56 }
 0x269   :  { %310 = vperm.xlu1 %379, %v302_v57  }
 0x2e4   :  { %v306_v58 = vpop.permute.xlu1 %305 }
 0x2e5   :  { %v313_v59 = vadd.f32 %v306_v58, %v287_v43 }
 0x2e7   :  { %315 = vst [vmem:[%s539_s5] sm:$0xff] %v313_v59 }
 0x2e8   :  { %v311_v60 = vpop.permute.xlu1 %310 }
 0x2e9   :  { %v314_v61 = vadd.f32 %v311_v60, %v291_v47 }
 0x2eb   :  { %316 = vst [vmem:[%s539_s5 + $0x8] sm:$0xff] %v314_v61 }

</bundles_post_ra>
